<compile_context>
chip_gen: v7x
topology: tpu7x:2x2x1
jax: 0.10.0
libtpu: 0.0.40
codegen_flags: <defaults>
</compile_context>

<pallas_src>
import jax
import jax.numpy as jnp
from jax.experimental import pallas as pl
from jax.experimental.pallas import tpu as pltpu


_MAX_TB = 8  # static unroll bound for batch blocking inside the kernel


def _make_kernel(TB):
    if TB == 1:
        def kernel(x_ref, w_ref, b_ref, o_ref):
            # x_ref/o_ref: (C, TL)  (batch dim squeezed);  w_ref: (C, C) f32;
            # b_ref: (C, 1) f32.
            y = jnp.dot(w_ref[...], x_ref[...],
                        preferred_element_type=jnp.float32)       # (C, TL) f32
            o_ref[...] = jnp.maximum(y + b_ref[...], 0.0).astype(o_ref.dtype)
        return kernel

    def kernel(x_ref, w_ref, b_ref, o_ref):
        # x_ref/o_ref: (TB, C, TL).  TB is small (<= 8): a static unroll keeps
        # every (C,C)@(C,TL) dot lane-dense and avoids batched-einsum relayouts.
        for b in range(TB):
            y = jnp.dot(w_ref[...], x_ref[b],
                        preferred_element_type=jnp.float32)       # (C, TL) f32
            o_ref[b] = jnp.maximum(y + b_ref[...], 0.0).astype(o_ref.dtype)
    return kernel


def _target_tile_bytes():
    # v7x (64 MiB VMEM, ~3.2 TB/s HBM) favours the high end (~4 MiB/step);
    # v5e/v6e are already at roofline by ~1-2 MiB.  Fall back to 2 MiB if the
    # hardware query is unavailable.
    try:
        info = pltpu.get_tpu_info()
        if info.vmem_capacity_bytes <= 64 * 2**20:
            return 4 * 2**20
    except Exception:
        pass
    return 2 * 2**20


def _choose_tiles(N, C, L, itemsize, target_bytes):
    # ---- length tile: lane axis, multiple of 128 (prefer 256), <= L ----------
    if L <= 256:
        TL = L                                   # full length; rely on TB below
    else:
        tl = max(128, target_bytes // (C * itemsize))
        q = 256 if tl >= 256 else 128
        tl = max(128, (tl // q) * q)
        TL = min(tl, L)
        # Prefer a TL that divides L (avoids a padded trailing tile), but only
        # if that costs at most half the tile size.
        if L % TL != 0:
            lo = max(128, TL // 2)
            for cand in range(TL, lo - 1, -128):
                if L % cand == 0:
                    TL = cand
                    break
    # ---- batch blocking: grow bytes/step toward target when C*TL is small ----
    tile_bytes = C * TL * itemsize
    TB = 1
    if tile_bytes < target_bytes:
        TB = int(min(N, _MAX_TB, max(1, target_bytes // tile_bytes)))
    # ---- keep >= 2 grid steps so both v7x TensorCores get work ---------------
    gN, gL = -(-N // TB), -(-L // TL)
    if gN * gL < 2:
        if N >= 2:
            TB = (N + 1) // 2
        elif L >= 256:
            TL = max(128, ((TL // 2) // 128) * 128)
    return TB, TL


def spatial_forward(x, conv_w, conv_b, bn_gamma, bn_beta, bn_mean, bn_var,
                    eps=1e-5, target_tile_bytes=None):
    """x: (N, C, L) (PyTorch NCL layout). Returns (N, C, L). Eval-mode forward."""
    N, C, L = x.shape
    itemsize = x.dtype.itemsize
    if target_tile_bytes is None:
        target_tile_bytes = _target_tile_bytes()

    # Fold eval-mode BatchNorm into the 1x1 conv (wrapper-side, C x C -- free):
    #   y = scale * (W x + b) + shift  ==  (scale*W) x + (scale*b + shift)
    scale = (bn_gamma.astype(jnp.float32) /
             jnp.sqrt(bn_var.astype(jnp.float32) + eps))                 # (C,)
    shift = bn_beta.astype(jnp.float32) - bn_mean.astype(jnp.float32) * scale
    w_fused = conv_w[:, :, 0].astype(jnp.float32) * scale[:, None]       # (C, C) f32
    b_fused = (conv_b.astype(jnp.float32) * scale + shift).reshape(C, 1)  # (C, 1) f32

    TB, TL = _choose_tiles(N, C, L, itemsize, target_tile_bytes)
    grid = (pl.cdiv(N, TB), pl.cdiv(L, TL))

    if TB == 1:
        # Squeeze the size-1 batch dim out of the kernel refs (no [0] indirection).
        x_block = o_block = (None, C, TL)
    else:
        x_block = o_block = (TB, C, TL)

    # VMEM budget: 2x in-tile + 2x out-tile (double-buffered) + resident params.
    tile_bytes = TB * C * TL * itemsize
    vmem_est = 4 * tile_bytes + 2 * (C * C + C) * 4
    vmem_limit = int(min(48 * 2**20, max(32 * 2**20, 2 * vmem_est)))

    cost = pl.CostEstimate(
        flops=2 * N * C * C * L,
        bytes_accessed=2 * N * C * L * itemsize + (C * C + C) * 4,
        transcendentals=0,
    )

    out = pl.pallas_call(
        _make_kernel(TB),
        out_shape=jax.ShapeDtypeStruct((N, C, L), x.dtype),
        grid=grid,
        in_specs=[
            pl.BlockSpec(x_block, lambda n, l: (n, 0, l)),   # x tile (pipelined)
            pl.BlockSpec((C, C), lambda n, l: (0, 0)),       # fused weight (resident)
            pl.BlockSpec((C, 1), lambda n, l: (0, 0)),       # fused bias (resident)
        ],
        out_specs=pl.BlockSpec(o_block, lambda n, l: (n, 0, l)),
        compiler_params=pltpu.CompilerParams(
            dimension_semantics=("parallel", "parallel"),
            vmem_limit_bytes=vmem_limit,
        ),
        cost_estimate=cost,
    )(x, w_fused, b_fused)
    return out


def _reference(x, conv_w, conv_b, bn_gamma, bn_beta, bn_mean, bn_var, eps=1e-5):
    y = jnp.einsum('oc,ncl->nol', conv_w[:, :, 0], x) + conv_b[None, :, None]
    scale = bn_gamma / jnp.sqrt(bn_var + eps)
    shift = bn_beta - bn_mean * scale
    y = y * scale[None, :, None] + shift[None, :, None]
    return jnp.maximum(y, 0.0)


if __name__ == "__main__":
    key = jax.random.PRNGKey(0)
    k1, k2, k3, k4, k5 = jax.random.split(key, 5)

    # --- primary small test (module-consistent shapes): batch=2, channels=4, L=16
    N, C, L = 2, 4, 16
    x = jax.random.normal(k1, (N, C, L), dtype=jnp.float32)
    conv_w = jax.random.normal(k2, (C, C, 1), dtype=jnp.float32) * 0.5   # Conv1d weight
    conv_b = jax.random.normal(k3, (C,), dtype=jnp.float32) * 0.1        # Conv1d bias
    bn_gamma = 1.0 + 0.1 * jax.random.normal(k4, (C,), dtype=jnp.float32)
    bn_beta = 0.1 * jax.random.normal(k5, (C,), dtype=jnp.float32)
    bn_mean = jnp.zeros((C,), dtype=jnp.float32)                         # running_mean
    bn_var = jnp.ones((C,), dtype=jnp.float32)                           # running_var

    out = spatial_forward(x, conv_w, conv_b, bn_gamma, bn_beta, bn_mean, bn_var)
    out = jax.block_until_ready(out)
    y_ref = _reference(x, conv_w, conv_b, bn_gamma, bn_beta, bn_mean, bn_var)
    assert out.shape == (N, C, L)
    assert jnp.allclose(out, y_ref, atol=1e-5, rtol=1e-5)

    # --- secondary test exercising the batch-blocked (TB > 1) kernel path -----
    N2, C2, L2 = 8, 8, 128
    x2 = jax.random.normal(k1, (N2, C2, L2), dtype=jnp.float32)
    w2 = jax.random.normal(k2, (C2, C2, 1), dtype=jnp.float32) * 0.2
    b2 = jax.random.normal(k3, (C2,), dtype=jnp.float32) * 0.1
    g2 = 1.0 + 0.1 * jax.random.normal(k4, (C2,), dtype=jnp.float32)
    be2 = 0.1 * jax.random.normal(k5, (C2,), dtype=jnp.float32)
    m2 = 0.05 * jax.random.normal(k4, (C2,), dtype=jnp.float32)
    v2 = 1.0 + 0.1 * jax.random.uniform(k5, (C2,), dtype=jnp.float32)

    out2 = spatial_forward(x2, w2, b2, g2, be2, m2, v2)
    out2 = jax.block_until_ready(out2)
    y_ref2 = _reference(x2, w2, b2, g2, be2, m2, v2)
    assert jnp.allclose(out2, y_ref2, atol=1e-4, rtol=1e-4)

    print("KERNEL_OK")
</pallas_src>

<mosaic_0001>
module attributes {stable_mosaic.version = 11 : i64} {
  func.func @kernel(%arg0: i32, %arg1: i32, %arg2: memref<1x4x16xf32, #tpu.memory_space<vmem>>, %arg3: memref<4x4xf32, #tpu.memory_space<vmem>>, %arg4: memref<4x1xf32, #tpu.memory_space<vmem>>, %arg5: memref<1x4x16xf32, #tpu.memory_space<vmem>>) attributes {dimension_semantics = [#tpu.dimension_semantics<parallel>, #tpu.dimension_semantics<parallel>], iteration_bounds = array<i64: 2, 1>, scalar_prefetch = 0 : i64, scratch_operands = 0 : i64, tpu.core_type = #tpu.core_type<tc>, window_params = [{transform_indices = @transform_0, window_bounds = array<i64: 1, 4, 16>}, {pipeline_mode = #tpu.pipeline_mode<synchronous>, transform_indices = @transform_1, window_bounds = array<i64: 4, 4>}, {pipeline_mode = #tpu.pipeline_mode<synchronous>, transform_indices = @transform_2, window_bounds = array<i64: 4, 1>}, {transform_indices = @transform_3, window_bounds = array<i64: 1, 4, 16>}]} {
    %c0 = arith.constant 0 : index
    %c0_0 = arith.constant 0 : index
    %0 = vector.load %arg3[%c0, %c0_0] : memref<4x4xf32, #tpu.memory_space<vmem>>, vector<4x4xf32>
    %c0_1 = arith.constant 0 : index
    %c0_2 = arith.constant 0 : index
    %c0_3 = arith.constant 0 : index
    %1 = vector.load %arg2[%c0_1, %c0_2, %c0_3] : memref<1x4x16xf32, #tpu.memory_space<vmem>>, vector<1x4x16xf32>
    %2 = vector.shape_cast %1 : vector<1x4x16xf32> to vector<4x16xf32>
    %cst = arith.constant dense<0.000000e+00> : vector<4x16xf32>
    %3 = tpu.matmul %0, %2, %cst {dimension_numbers = #tpu.dot_dimension_numbers<[1], [0], [0], [1], [0, 0, 1, 1], [], []>} : vector<4x4xf32>, vector<4x16xf32>, vector<4x16xf32> -> vector<4x16xf32>
    %c0_4 = arith.constant 0 : index
    %c0_5 = arith.constant 0 : index
    %4 = vector.load %arg4[%c0_4, %c0_5] : memref<4x1xf32, #tpu.memory_space<vmem>>, vector<4x1xf32>
    %5 = vector.broadcast %4 : vector<4x1xf32> to vector<4x16xf32>
    %6 = arith.addf %3, %5 : vector<4x16xf32>
    %cst_6 = arith.constant 0.000000e+00 : f32
    %7 = vector.broadcast %cst_6 : f32 to vector<4x16xf32>
    %8 = arith.maximumf %6, %7 : vector<4x16xf32>
    %c0_7 = arith.constant 0 : index
    %c0_8 = arith.constant 0 : index
    %c0_9 = arith.constant 0 : index
    %9 = vector.load %arg5[%c0_7, %c0_8, %c0_9] : memref<1x4x16xf32, #tpu.memory_space<vmem>>, vector<1x4x16xf32>
    %10 = vector.shape_cast %9 : vector<1x4x16xf32> to vector<4x16xf32>
    %11 = vector.shape_cast %8 : vector<4x16xf32> to vector<1x4x16xf32>
    tpu.vector_store %arg5[%c0_7, %c0_8, %c0_9], %11 {strides = array<i32>} : memref<1x4x16xf32, #tpu.memory_space<vmem>>, vector<1x4x16xf32>,
    return
  }
  func.func @transform_0(%arg0: i32, %arg1: i32) -> (i32, i32, i32) {
    %c0_i32 = arith.constant 0 : i32
    %c0_i32_0 = arith.constant 0 : i32
    return %arg0, %c0_i32, %arg1 : i32, i32, i32
  }
  func.func @transform_1(%arg0: i32, %arg1: i32) -> (i32, i32) {
    %c0_i32 = arith.constant 0 : i32
    %c0_i32_0 = arith.constant 0 : i32
    %c0_i32_1 = arith.constant 0 : i32
    return %c0_i32, %c0_i32_0 : i32, i32
  }
  func.func @transform_2(%arg0: i32, %arg1: i32) -> (i32, i32) {
    %c0_i32 = arith.constant 0 : i32
    %c0_i32_0 = arith.constant 0 : i32
    %c0_i32_1 = arith.constant 0 : i32
    return %c0_i32, %c0_i32_0 : i32, i32
  }
  func.func @transform_3(%arg0: i32, %arg1: i32) -> (i32, i32, i32) {
    %c0_i32 = arith.constant 0 : i32
    %c0_i32_0 = arith.constant 0 : i32
    return %arg0, %c0_i32, %arg1 : i32, i32, i32
  }
}

</mosaic_0001>

<bundles_post_ra>
// kernel: tpu_custom_call.1
= control target key start
LH: loop header
LB: loop body
LE: loop exit
PB: predicated region body
PF: predicated region fallthrough
CT: control target
= control target key end

     0   :  { %8 = vsyncpa [#allocation3], 0  ;;  %s792_s0 = inlined_call_operand.hbm [shape: f32[2,4,16], index: 0, kind: input, shape index: {}]   ;;  %s793_s1 = inlined_call_operand.vmem [shape: f32[4,4], index: 1, kind: input, shape index: {}]   ;;  %s794_s2 = inlined_call_operand.vmem [shape: f32[4,1], index: 2, kind: input, shape index: {}]   ;;  %s795_s3 = inlined_call_operand.hbm [shape: f32[2,4,16], index: 3, kind: output, shape index: {}]  }
   0x1   :  { %10 = vsyncpa [#allocation3 + $0x1], 0 }
   0x2   :  { %11 = vsyncpa [#allocation4], 0 }
   0x3   :  { %13 = vsyncpa [#allocation4 + $0x1], 0  ;;  %s614_s12 = smov 0   ;;  %s616_s13 = smov 0  }
   0x4   :  { %s618_s14 = smov 0   ;;  %s620_s15 = smov 0  }
   0x5   :  { %s622_s16 = smov 0   ;;  %s624_s17 = smov 0  }
   0x6 LB: > { %s387_s18 = sadd.s32 4294967295, %s587_s17   ;;  %s388_s19 = sadd.s32 4294967294, %s587_s17   ;;  %s587_s17 = sphi %s624_s17, %s19_s17   ;;  %s583_s16 = sphi %s622_s16, %s811_s16   ;;  %s579_s15 = sphi %s620_s15, %s810_s15   ;;  %s575_s14 = sphi %s618_s14, %s809_s14   ;;  %s571_s13 = sphi %s616_s13, %s808_s13   ;;  %s567_s12 = sphi %s614_s12, %s807_s12  }
   0x7   : > { %s31_s20 = sadd.s32 1, %s583_s16  ;;  %s40_s21 = sadd.s32 1, %s575_s14 }
   0x8   : > { %p33_p0 = scmp.ge.s32.totalorder %s31_s20, 2  ;;  %p47_p1 = scmp.ne.s32.totalorder %s575_s14, %s571_s13 }
   0x9   : > { %p48_p2 = scmp.eq.s32.totalorder %s587_s17, 0  ;;  %p53_p3 = scmp.ne.s32.totalorder %s571_s13, %s567_s12 }
   0xa   : > { %s813_s20 = smov (%p33_p0, %s31_s20), 0  ;;  %p54_p5 = scmp.eq.s32.totalorder %s387_s18, 0 }
   0xb   : > { %p655_p4 = por %p48_p2, %p47_p1  ;;  %s35_s23 = ssub.s32 %s583_s16, %s813_s20 }
   0xc   : > { %p121_p6 = scmp.eq.s32.totalorder %s387_s18, 1  ;;  %p38_p7 = scmp.eq.s32.totalorder %s35_s23, 0 }
   0xd   : > { %p661_p8 = por %p54_p5, %p53_p3  ;;  %p127_p10 = scmp.eq.s32.totalorder %s388_s19, 1 }
   0xe   : > { %p665_p9 = por %p121_p6, %p47_p1  ;;  %p421_p13 = scmp.lt.s32.totalorder %s587_s17, 2 }
   0xf   : > { %s670_s26 = scalar_select %p38_p7, %s575_s14, %s40_s21  }
  0x10   : > { %s799_s25 = scalar_select %p665_p9, 1, 0 }
  0x11   : > { %p672_p11 = por %p127_p10, %p53_p3  ;;  %s153_s28 = sand.u32 1, %s575_s14  }
  0x12   : > { %s391_s29 = sshll.u32 %s153_s28, 2  ;;  %s392_s30 = sshll.u32 %s583_s16, 6 }
  0x13   : > { %s800_s27 = scalar_select %p672_p11, 1, 0 }
  0x14   : > { %s683_s6 = scalar_lea.hbm %s792_s0, %s392_s30  ;;  %s157_s7 = scalar_lea.vmem [#allocation2], %s391_s29 }
  0x15   : > { %s165_s8 = sshll.u32 %s157_s7, 4  ;;  %p689_p0 = pnand %p421_p13, %p655_p4  ;;  %s685_s8 = int_to_ptr.vmem [resolvable:$true] %s165_s8 }
  0x16   : > { %s154_s10 = scalar_lea.sflag [#allocation3], %s153_s28  ;;  %s475_s11 = scalar_lea.hbm %s683_s6, 64 }
  0x17   : > { %p476_p3 = scmp.ne.s32.totalorder %s683_s6, %s475_s11  ;;  %p477_p5 = pneg %p689_p0 }
  0x18   : > { %s480_s21 = scalar_lea.hbm %s792_s0, 128  ;;  %p481_p4 = scmp.lt.u32.totalorder %s683_s6, %s792_s0 }
  0x19   : > { %p478_p6 = pnand %p477_p5, %p476_p3  ;;  %p482_p10 = scmp.lt.u32.totalorder %s480_s21, %s475_s11 }
  0x1a   : > { %p484_p12 = scmp.lt.u32.totalorder %s475_s11, %s683_s6 }
  0x1b   : > { %p479_p7 = pneg %p478_p6  ;;  %p483_p13 = por %p482_p10, %p481_p4 }
  0x1d   : > { %p485_p1 = por %p484_p12, %p483_p13 }
  0x1f   : > { %p486_p2 = pnand %p485_p1, %p479_p7 }
  0x21   : > { %489 = shalt.err (!%p486_p2)
}
  0x22   : > { %s490_s28 = scalar_lea.vmem %s685_s8, 64  ;;  %s589_s29 = smov [#allocation2]  }
  0x23   : > { %p491_p3 = scmp.ne.s32.totalorder %s685_s8, %s490_s28  ;;  %s495_s30 = sshll.u32 %s589_s29, 4  ;;  %s496_s30 = int_to_ptr.vmem [resolvable:$false] %s495_s30 }
  0x24   : > { %s497_s4 = scalar_lea.vmem %s496_s30, 128  ;;  %p498_p9 = scmp.lt.s32.totalorder %s685_s8, %s496_s30 }
  0x25   : > { %p493_p6 = pnand %p491_p3, %p477_p5  ;;  %p499_p4 = scmp.lt.s32.totalorder %s497_s4, %s490_s28 }
  0x27   : > { %p494_p11 = pneg %p493_p6  ;;  %p500_p10 = por %p499_p4, %p498_p9 }
  0x29   : > { %p501_p12 = pnand %p500_p10, %p494_p11 }
  0x2b   : > { %504 = shalt.err (!%p501_p12)
}
  0x2c   : > { %416 = dma.hbm_to_vmem [thread:$0]  (!%p689_p0), %s683_s6, 64, %s685_s8, %s154_s10  }
  0x2d   : > { %p802_p1 = scmp.lt.s32.totalorder %s587_s17, 3  ;;  %p803_p2 = scmp.ge.s32.totalorder %s587_s17, 1 }
  0x2f   : > { %p171_p5 = pnand %p803_p2, %p802_p1 }
  0x30   : > { %s725_s5 = sand.u32 (!%p171_p5), 1, %s571_s13  }
  0x31   : > { %174 = sbr.rel (%p171_p5) target bundleno = 290 (0x122), region = 32  ;;  %s394_s7 = sshll.u32 (!%p171_p5), %s725_s5, 2 }
  0x32   : > { %s177_s11 = scalar_lea.sflag (!%p171_p5), [#allocation3], %s725_s5  ;;  %s180_s18 = scalar_lea.vmem (!%p171_p5), [#allocation2], %s394_s7 }
  0x38   : > { %558 = dma.done.wait (%p661_p8), %s177_s11, 64  }
  0x39   : > { %560 = vsyncadd (%p661_p8), %s177_s11, 4294967232  ;;  %v590_v0 = vmov 0.0   ;;  %vm591_vm0 = vmmov 0   ;;  %v592_v1 = vmov 0   ;;  %vm215_vm1 = vcmask 1043456   ;;  %s399_s24 = sshll.u32 %s579_s15, 6 }
  0x3a   : > { %404 = vmatprep.subr.mxu0 %v590_v0  ;;  %406 = vmatprep.mubr.msk.f32.mxu0 %vm591_vm0, %v590_v0  ;;  %vm211_vm2 = vcmask 31744   ;;  %v204_v2 = vld [vmem:[%s180_s18] sm:$0xf]  ;;  %s202_s19 = scalar_lea.vmem [#allocation5], %s394_s7  ;;  %vm290_vm3 = vcmask 125952   ;;  %s743_s28 = scalar_lea.hbm %s795_s3, %s399_s24 }
  0x3b   : > { %474 = vset.pattern.permute.xlu0 %v592_v1  ;;  %v203_v3 = vld [vmem:[%s793_s1] sm:$0xf]  ;;  %405 = vmatpush3.msk.msra.mxu0 %vm215_vm1, %v204_v2  ;;  %s307_s21 = sshll.u32 %s202_s19, 4  ;;  %s293_s29 = scalar_lea.sflag [#allocation4], %s725_s5  ;;  %s745_s21 = int_to_ptr.vmem [resolvable:$true] %s307_s21 }
  0x3c   : > { %v205_v4 = vld [vmem:[%s794_s2] sm:$0xf]  ;;  %407 = vmatmul.mubr.msk.f32.vlgmr.msra.gmra.mrb[0].mxu0 %vm211_vm2, %v203_v3  ;;  %s505_s30 = scalar_lea.vmem %s745_s21, 64  ;;  %p804_p9 = scmp.ne.s32.totalorder %s799_s25, 0 }
  0x3d   : > { %208 = vperm.xlu0 %474, %v205_v4   ;;  %p506_p8 = scmp.ne.s32.totalorder %s745_s21, %s505_s30  ;;  %s593_s15 = smov [#allocation5]  }
  0x3e   : > { %s509_s4 = sshll.u32 %s593_s15, 4  ;;  %s510_s4 = int_to_ptr.vmem [resolvable:$false] %s509_s4 }
  0x3f   : > { %p507_p11 = pnand %p506_p8, %p804_p9  ;;  %s511_s7 = scalar_lea.vmem %s510_s4, 128 }
  0x40   : > { %p512_p7 = scmp.lt.s32.totalorder %s745_s21, %s510_s4  ;;  %p513_p13 = scmp.lt.s32.totalorder %s511_s7, %s505_s30 }
  0x41   : > { %p508_p0 = pneg %p507_p11 }
  0x42   : > { %p514_p3 = por %p513_p13, %p512_p7 }
  0x44   : > { %p515_p6 = pnand %p514_p3, %p508_p0 }
  0xbc   : > { %v209_v5 = vpop.permute.xlu0 %208 }
 0x10f   : > { %v285_v6 = vpop.f32.mrb[0].mxu0 }
 0x110   : > { %v286_v7 = vadd.f32 %v285_v6, %v209_v5  ;;  %v408_v8 = vpop.f32.mrb[1].mxu0 }
 0x112   : > { %v289_v9 = vmax.f32 %v286_v7, 0.0 }
 0x114   : > { %291 = vst.msk [vmem:[%s202_s19] sm:$0xf] %vm290_vm3, %v289_v9 }
 0x115   : > { %518 = shalt.err (!%p515_p6)
}
 0x116   : > { %s519_s5 = scalar_lea.hbm %s743_s28, 64  ;;  %s523_s6 = scalar_lea.hbm %s795_s3, 128 }
 0x117   : > { %p520_p4 = scmp.ne.s32.totalorder %s743_s28, %s519_s5  ;;  %p524_p1 = scmp.lt.u32.totalorder %s743_s28, %s795_s3 }
 0x118   : > { %p525_p2 = scmp.lt.u32.totalorder %s523_s6, %s519_s5  ;;  %p527_p8 = scmp.lt.u32.totalorder %s519_s5, %s743_s28 }
 0x119   : > { %p521_p10 = pnand %p520_p4, %p804_p9 }
 0x11a   : > { %p526_p5 = por %p525_p2, %p524_p1 }
 0x11b   : > { %p522_p12 = pneg %p521_p10 }
 0x11c   : > { %p528_p11 = por %p527_p8, %p526_p5 }
 0x11e   : > { %p529_p0 = pnand %p528_p11, %p522_p12 }
 0x120   : > { %532 = shalt.err (!%p529_p0)
}
 0x121   : > { %411 = dma.vmem_to_hbm [thread:$0]  (%p804_p9), %s745_s21, 64, %s743_s28, %s293_s29  }
 0x122 PF: > { %s319_s10 = sand.u32 1, %s567_s12   ;;  %p805_p7 = scmp.ne.s32.totalorder %s800_s27, 0 }
 0x123   : > { %p806_p13 = scmp.ge.s32.totalorder %s587_s17, 2  ;;  %s320_s24 = scalar_lea.sflag [#allocation4], %s319_s10 }
 0x125   : > { %p418_p3 = pnand %p806_p13, %p805_p7 }
 0x127   : > { %562 = dma.done.wait (!%p418_p3), %s320_s24, 64  }
 0x128   : > { %564 = vsyncadd (!%p418_p3), %s320_s24, 4294967232  ;;  %s19_s17 = sadd.s32 1, %s587_s17   ;;  %s807_s12 = smov %s571_s13 }
 0x129   : > { %p16_p6 = scmp.ge.s32.totalorder %s19_s17, 4   ;;  %s808_s13 = smov %s575_s14 }
 0x12a   : > { %s809_s14 = smov %s670_s26  ;;  %s810_s15 = smov %s583_s16 }
 0x12b   : > { %s811_s16 = smov %s813_s20  ;;  %18 = sbr.rel (!%p16_p6) target bundleno = 6 (0x6), region = 77 }
 0x132   :  { %325 = vsyncpa [#allocation3], 1 }
 0x133   :  { %327 = vsyncpa [#allocation3 + $0x1], 1 }
 0x134   :  { %328 = vsyncpa [#allocation4], 1 }
 0x135   :  { %330 = vsyncpa [#allocation4 + $0x1], 1 }

</bundles_post_ra>
